<compile_context>
chip_gen: v7x
topology: tpu7x:2x2x1
jax: 0.10.0
libtpu: 0.0.40
codegen_flags: <defaults>
</compile_context>

<pallas_src>
import jax
import jax.numpy as jnp
from jax.experimental import pallas as pl
from jax.experimental.pallas import tpu as pltpu

_LANES = 128        # vreg lane width
_SUBLANES = 8       # f32 sublane tile
_MAX_TB = 1024      # cap on the batch tile
_MAX_TV = 2048      # HBM roofline ~saturates at 512-1024 wide; keep VMEM headroom
_NEG_BIG = -1e30    # "minus infinity" for padded vocab columns (finite: no inf*0)


def _round_up(x, m):
    return ((x + m - 1) // m) * m


def _vmem_limit_and_budget():
    """Explicit scoped-VMEM limit (defaults: 16 MiB v5e / 32 MiB v6e,v7x are
    far below physical and would force tiny tiles) + tile-picker byte budget."""
    cap = None
    try:
        cap = int(getattr(pltpu.get_tpu_info(), "vmem_capacity_bytes", 0)) or None
    except Exception:
        cap = None
    if cap is None:
        cap = 64 * 1024 * 1024        # conservative fallback: v7x per-TC VMEM
    limit = (cap * 3) // 4            # leave headroom for Mosaic-internal scratch
    budget = (limit * 13) // 20       # ~65% of the limit for our own buffers
    return limit, budget


def _choose_tiles(B, D, V, z_bytes, w_bytes, t_bytes, budget):
    """Pick (tb, tv, Bp, Vp) under a per-step VMEM byte budget.

    Prefers a single batch tile (tb covers the whole padded batch) so E_weight
    is read from HBM exactly once, then grows the vocab tile as large as the
    budget allows (long DMAs, few grid steps)."""
    # Cost that does not scale with tv (Z block is double-buffered by the
    # pipeline machinery even though its index rarely changes).
    def fixed_cost(tb_):
        return (2 * z_bytes * tb_ * D        # Z block
                + 4 * tb_ * _LANES * 4       # 4 lane-wide f32 accumulators
                + 2 * tb_ * 4)               # (tb, 1) output block

    tb = min(_round_up(B, _SUBLANES), _MAX_TB)
    while tb > _SUBLANES and fixed_cost(tb) > budget // 4:
        tb = _round_up(tb // 2, _SUBLANES)
    Bp = _round_up(B, tb)
    # TODO(synk): for B > _MAX_TB, reorder to vocab-outer/batch-inner with
    # per-batch-tile scratch so E_weight is still streamed only once.

    # Per-128-vocab-lanes streaming cost: double-buffered E / targets / bias
    # tiles plus the f32 scores slab.
    per128 = _LANES * (2 * w_bytes * D + 2 * t_bytes * tb + 2 * 4 + 4 * tb)
    remaining = max(budget - fixed_cost(tb), per128)
    max_chunks = max(1, remaining // per128)

    v_aligned = _round_up(V, _LANES)
    tv_cap = min(_MAX_TV, v_aligned, max_chunks * _LANES)
    tv_cap = max(_LANES, (tv_cap // _LANES) * _LANES)

    # Prefer a tile width that divides the lane-aligned vocab (no extra pad
    # traffic); fall back to the cap + padding when only tiny divisors exist.
    best_div = None
    for cand in range(tv_cap, 0, -_LANES):
        if v_aligned % cand == 0:
            best_div = cand
            break
    if best_div is not None and (
            best_div == tv_cap
            or best_div >= 512
            or _round_up(v_aligned, tv_cap) * 8 > v_aligned * 9):  # >12.5% pad
        tv = best_div
    else:
        tv = tv_cap
    Vp = _round_up(V, tv)
    return tb, tv, Bp, Vp


def _decoder_kernel(z_ref, w_ref, b_ref, t_ref, out_ref,
                    m_sc, l_sc, st_sc, sts_sc):
    # z_ref: (tb, D)  w_ref: (D, tv)  b_ref: (1, tv)  t_ref: (tb, tv)
    # out_ref: (tb, 1) -- per-row sum(log_probs * targets), written at finalize.
    # Scratch (all (tb, 128) f32, lane-wide so the per-vocab-tile work is pure
    # VPU/EUP; the single cross-lane XLU collapse happens only in finalize):
    #   m_sc: running per-lane max   l_sc: running per-lane sum exp(s - m)
    #   st_sc: per-lane sum(t)       sts_sc: per-lane sum(scores * t)
    vj = pl.program_id(1)
    tv = w_ref.shape[1]
    n_chunks = tv // _LANES

    @pl.when(vj == 0)
    def _init():
        m_sc[...] = jnp.full_like(m_sc, -jnp.inf)
        l_sc[...] = jnp.zeros_like(l_sc)
        st_sc[...] = jnp.zeros_like(st_sc)
        sts_sc[...] = jnp.zeros_like(sts_sc)

    # MXU matmul with f32 accumulation; bias folded in per vocab tile.
    scores = jnp.dot(z_ref[...], w_ref[...],
                     preferred_element_type=jnp.float32)        # (tb, tv) f32
    scores = scores + b_ref[...].astype(jnp.float32)
    t = t_ref[...].astype(jnp.float32)

    # Pass 1 (VPU only): per-lane running max over 128-wide lane-aligned chunks.
    m_prev = m_sc[...]
    m_new = m_prev
    for j in range(n_chunks):
        m_new = jnp.maximum(m_new, scores[:, j * _LANES:(j + 1) * _LANES])
    m_sc[...] = m_new

    # Pass 2 (VPU + EUP): per-lane online sum-exp and plain lane-wise sums.
    l_acc = jnp.exp(m_prev - m_new) * l_sc[...]
    st_acc = st_sc[...]
    sts_acc = sts_sc[...]
    for j in range(n_chunks):
        sl = slice(j * _LANES, (j + 1) * _LANES)
        s_c = scores[:, sl]
        t_c = t[:, sl]
        l_acc = l_acc + jnp.exp(s_c - m_new)
        st_acc = st_acc + t_c
        sts_acc = sts_acc + s_c * t_c
    l_sc[...] = l_acc
    st_sc[...] = st_acc
    sts_sc[...] = sts_acc

    # Finalize: one cross-lane collapse per batch tile (never per vocab tile).
    @pl.when(vj == pl.num_programs(1) - 1)
    def _finalize():
        m_lane = m_sc[...]
        m_row = jnp.max(m_lane, axis=1, keepdims=True)                  # (tb, 1)
        l_row = jnp.sum(jnp.exp(m_lane - m_row) * l_sc[...],
                        axis=1, keepdims=True)
        lse = m_row + jnp.log(l_row)
        st_row = jnp.sum(st_sc[...], axis=1, keepdims=True)
        sts_row = jnp.sum(sts_sc[...], axis=1, keepdims=True)
        # sum(log_softmax(scores) * t) = sum(scores*t) - lse * sum(t)
        out_ref[...] = sts_row - lse * st_row


def decoder_forward(Z, E_weight, b, targets, *, tb=None, tv=None):
    """Mean log-likelihood matching the PyTorch Decoder.forward.

    Inputs are streamed in whatever dtype they are passed in (no wrapper-side
    casts); all softmax / accumulation math is f32 inside the kernel."""
    B, D = Z.shape
    Dw, V = E_weight.shape
    assert D == Dw and targets.shape == (B, V) and b.shape == (1, V)

    z_bytes = jnp.dtype(Z.dtype).itemsize
    w_bytes = jnp.dtype(E_weight.dtype).itemsize
    t_bytes = jnp.dtype(targets.dtype).itemsize

    vmem_limit, budget = _vmem_limit_and_budget()
    tb_auto, tv_auto, Bp, Vp = _choose_tiles(
        B, D, V, z_bytes, w_bytes, t_bytes, budget)
    if tb is None:
        tb = tb_auto
    else:
        tb = _round_up(tb, _SUBLANES)
        Bp = _round_up(B, tb)
    if tv is None:
        tv = tv_auto
    else:
        tv = _round_up(tv, _LANES)
        Vp = _round_up(V, tv)

    # Bias participates in max/sum-exp -> carry it in f32 (only 4*V bytes).
    b32 = b.astype(jnp.float32)

    # Ragged shapes: pad to tile multiples with neutral values (zero E columns
    # + -1e30 bias -> exp underflows to 0; zero targets; zero Z rows -> per-row
    # result exactly 0).
    # TODO(synk): for production-sized ragged vocabs, mask inside the kernel
    # instead of padding (the pad is one extra HBM pass over E/targets).
    if Vp != V:
        E_weight = jnp.pad(E_weight, ((0, 0), (0, Vp - V)))
        targets = jnp.pad(targets, ((0, 0), (0, Vp - V)))
        b32 = jnp.pad(b32, ((0, 0), (0, Vp - V)), constant_values=_NEG_BIG)
    if Bp != B:
        Z = jnp.pad(Z, ((0, Bp - B), (0, 0)))
        targets = jnp.pad(targets, ((0, Bp - B), (0, 0)))

    # Grid: batch tiles (usually exactly 1, so E_weight is streamed once) x
    # vocab tiles (reduction axis, last).
    grid = (Bp // tb, Vp // tv)

    # TODO(synk): on v7x, split the vocab axis across the two TensorCores
    # (per-core partial (m,l,st,sts) + tiny combine) so the E stream is read
    # once chip-wide; batch-'parallel' would duplicate the dominant stream.
    per_row = pl.pallas_call(
        _decoder_kernel,
        out_shape=jax.ShapeDtypeStruct((Bp, 1), jnp.float32),
        grid_spec=pltpu.PrefetchScalarGridSpec(
            num_scalar_prefetch=0,
            grid=grid,
            in_specs=[
                pl.BlockSpec((tb, D), lambda bi, vj: (bi, 0)),     # Z (resident)
                pl.BlockSpec((D, tv), lambda bi, vj: (0, vj)),     # E_weight tile
                pl.BlockSpec((1, tv), lambda bi, vj: (0, vj)),     # bias tile
                pl.BlockSpec((tb, tv), lambda bi, vj: (bi, vj)),   # targets tile
            ],
            out_specs=pl.BlockSpec((tb, 1), lambda bi, vj: (bi, 0)),
            scratch_shapes=[pltpu.VMEM((tb, _LANES), jnp.float32)] * 4,
        ),
        compiler_params=pltpu.CompilerParams(
            dimension_semantics=("arbitrary", "arbitrary"),
            vmem_limit_bytes=vmem_limit),
    )(Z, E_weight, b32, targets)

    # Padded batch rows contribute exactly 0; mean over the true batch only.
    return jnp.sum(per_row[:B, 0]) / B


def decoder_forward_ref(Z, E_weight, b, targets):
    scores = Z @ E_weight + b
    log_probs = jax.nn.log_softmax(scores, axis=1)
    return jnp.mean(jnp.sum(log_probs * targets, axis=1))


if __name__ == "__main__":
    # Shapes consistent with Decoder.forward: Z (batch, dim_encoding),
    # E.weight (dim_encoding, vocab), b (1, vocab), targets (batch, vocab).
    batch, dim_encoding, vocab_size = 8, 32, 512

    key = jax.random.PRNGKey(0)
    kz, kw, kt = jax.random.split(key, 3)
    Z = jax.random.normal(kz, (batch, dim_encoding), dtype=jnp.float32)
    # nn.Embedding default init N(0,1); nn.Parameter b initialized to zeros.
    E_weight = jax.random.normal(kw, (dim_encoding, vocab_size), dtype=jnp.float32)
    b = jnp.zeros((1, vocab_size), dtype=jnp.float32)
    targets = jax.random.uniform(kt, (batch, vocab_size), dtype=jnp.float32)

    ll_ref = decoder_forward_ref(Z, E_weight, b, targets)

    # 1) Forced small vocab tile -> 4 vocab grid steps (exercises the online
    #    log-sum-exp accumulation across tiles).
    ll = decoder_forward(Z, E_weight, b, targets, tv=128)
    jax.block_until_ready(ll)
    assert jnp.allclose(ll, ll_ref, rtol=1e-5, atol=1e-5), (ll, ll_ref)

    # 2) Auto (VMEM-budget-aware) tiling -> single vocab tile at these shapes.
    ll_auto = decoder_forward(Z, E_weight, b, targets)
    jax.block_until_ready(ll_auto)
    assert jnp.allclose(ll_auto, ll_ref, rtol=1e-5, atol=1e-5), (ll_auto, ll_ref)

    # 3) Ragged shapes (batch=5, vocab=200) exercise the padding path.
    b2, v2 = 5, 200
    Z2 = jax.random.normal(kz, (b2, dim_encoding), dtype=jnp.float32)
    E2 = jax.random.normal(kw, (dim_encoding, v2), dtype=jnp.float32)
    bb2 = 0.1 * jax.random.normal(kt, (1, v2), dtype=jnp.float32)
    T2 = jax.random.uniform(kt, (b2, v2), dtype=jnp.float32)
    ll2 = decoder_forward(Z2, E2, bb2, T2)
    jax.block_until_ready(ll2)
    ll2_ref = decoder_forward_ref(Z2, E2, bb2, T2)
    assert jnp.allclose(ll2, ll2_ref, rtol=1e-5, atol=1e-5), (ll2, ll2_ref)

    # 4) bf16-resident inputs (no wrapper-side cast pass; math stays f32).
    Zb = Z.astype(jnp.bfloat16)
    Eb = E_weight.astype(jnp.bfloat16)
    Tb = targets.astype(jnp.bfloat16)
    llb = decoder_forward(Zb, Eb, b, Tb, tv=256)
    jax.block_until_ready(llb)
    llb_ref = decoder_forward_ref(Zb.astype(jnp.float32), Eb.astype(jnp.float32),
                                  b, Tb.astype(jnp.float32))
    assert jnp.allclose(llb, llb_ref, rtol=2e-2, atol=2e-2), (llb, llb_ref)

    print("KERNEL_OK")
</pallas_src>

<mosaic_0001>
module attributes {stable_mosaic.version = 11 : i64} {
  func.func @_decoder_kernel(%arg0: i32, %arg1: i32, %arg2: memref<8x32xf32, #tpu.memory_space<vmem>>, %arg3: memref<32x128xf32, #tpu.memory_space<vmem>>, %arg4: memref<1x128xf32, #tpu.memory_space<vmem>>, %arg5: memref<8x128xf32, #tpu.memory_space<vmem>>, %arg6: memref<8x1xf32, #tpu.memory_space<vmem>>, %arg7: memref<8x128xf32, #tpu.memory_space<vmem>>, %arg8: memref<8x128xf32, #tpu.memory_space<vmem>>, %arg9: memref<8x128xf32, #tpu.memory_space<vmem>>, %arg10: memref<8x128xf32, #tpu.memory_space<vmem>>) attributes {dimension_semantics = [#tpu.dimension_semantics<arbitrary>, #tpu.dimension_semantics<arbitrary>], iteration_bounds = array<i64: 1, 4>, scalar_prefetch = 0 : i64, scratch_operands = 4 : i64, tpu.core_type = #tpu.core_type<tc>, window_params = [{transform_indices = @transform_0, window_bounds = array<i64: 8, 32>}, {transform_indices = @transform_1, window_bounds = array<i64: 32, 128>}, {transform_indices = @transform_2, window_bounds = array<i64: 1, 128>}, {transform_indices = @transform_3, window_bounds = array<i64: 8, 128>}, {transform_indices = @transform_4, window_bounds = array<i64: 8, 1>}]} {
    %c0_i32 = arith.constant 0 : i32
    %0 = arith.cmpi eq, %arg1, %c0_i32 : i32
    %1 = arith.extui %0 : i1 to i32
    %c0_i32_0 = arith.constant 0 : i32
    %2 = arith.cmpi ne, %1, %c0_i32_0 : i32
    scf.if %2 {
      %cst_25 = arith.constant 0xFF800000 : f32
      %31 = vector.broadcast %cst_25 : f32 to vector<8x128xf32>
      %c0_26 = arith.constant 0 : index
      %c0_27 = arith.constant 0 : index
      %32 = vector.load %arg7[%c0_26, %c0_27] : memref<8x128xf32, #tpu.memory_space<vmem>>, vector<8x128xf32>
      tpu.vector_store %arg7[%c0_26, %c0_27], %31 {strides = array<i32>} : memref<8x128xf32, #tpu.memory_space<vmem>>, vector<8x128xf32>,
      %cst_28 = arith.constant 0.000000e+00 : f32
      %33 = vector.broadcast %cst_28 : f32 to vector<8x128xf32>
      %c0_29 = arith.constant 0 : index
      %c0_30 = arith.constant 0 : index
      %34 = vector.load %arg8[%c0_29, %c0_30] : memref<8x128xf32, #tpu.memory_space<vmem>>, vector<8x128xf32>
      tpu.vector_store %arg8[%c0_29, %c0_30], %33 {strides = array<i32>} : memref<8x128xf32, #tpu.memory_space<vmem>>, vector<8x128xf32>,
      %cst_31 = arith.constant 0.000000e+00 : f32
      %35 = vector.broadcast %cst_31 : f32 to vector<8x128xf32>
      %c0_32 = arith.constant 0 : index
      %c0_33 = arith.constant 0 : index
      %36 = vector.load %arg9[%c0_32, %c0_33] : memref<8x128xf32, #tpu.memory_space<vmem>>, vector<8x128xf32>
      tpu.vector_store %arg9[%c0_32, %c0_33], %35 {strides = array<i32>} : memref<8x128xf32, #tpu.memory_space<vmem>>, vector<8x128xf32>,
      %cst_34 = arith.constant 0.000000e+00 : f32
      %37 = vector.broadcast %cst_34 : f32 to vector<8x128xf32>
      %c0_35 = arith.constant 0 : index
      %c0_36 = arith.constant 0 : index
      %38 = vector.load %arg10[%c0_35, %c0_36] : memref<8x128xf32, #tpu.memory_space<vmem>>, vector<8x128xf32>
      tpu.vector_store %arg10[%c0_35, %c0_36], %37 {strides = array<i32>} : memref<8x128xf32, #tpu.memory_space<vmem>>, vector<8x128xf32>,
    } else {
    }
    %c0 = arith.constant 0 : index
    %c0_1 = arith.constant 0 : index
    %3 = vector.load %arg2[%c0, %c0_1] : memref<8x32xf32, #tpu.memory_space<vmem>>, vector<8x32xf32>
    %c0_2 = arith.constant 0 : index
    %c0_3 = arith.constant 0 : index
    %4 = vector.load %arg3[%c0_2, %c0_3] : memref<32x128xf32, #tpu.memory_space<vmem>>, vector<32x128xf32>
    %cst = arith.constant dense<0.000000e+00> : vector<8x128xf32>
    %5 = tpu.matmul %3, %4, %cst {dimension_numbers = #tpu.dot_dimension_numbers<[1], [0], [0], [1], [0, 0, 1, 1], [], []>} : vector<8x32xf32>, vector<32x128xf32>, vector<8x128xf32> -> vector<8x128xf32>
    %c0_4 = arith.constant 0 : index
    %c0_5 = arith.constant 0 : index
    %6 = vector.load %arg4[%c0_4, %c0_5] : memref<1x128xf32, #tpu.memory_space<vmem>>, vector<1x128xf32>
    %7 = vector.broadcast %6 : vector<1x128xf32> to vector<8x128xf32>
    %8 = arith.addf %5, %7 : vector<8x128xf32>
    %c0_6 = arith.constant 0 : index
    %c0_7 = arith.constant 0 : index
    %9 = vector.load %arg5[%c0_6, %c0_7] : memref<8x128xf32, #tpu.memory_space<vmem>>, vector<8x128xf32>
    %c0_8 = arith.constant 0 : index
    %c0_9 = arith.constant 0 : index
    %10 = vector.load %arg7[%c0_8, %c0_9] : memref<8x128xf32, #tpu.memory_space<vmem>>, vector<8x128xf32>
    %11 = arith.maximumf %10, %8 : vector<8x128xf32>
    %c0_10 = arith.constant 0 : index
    %c0_11 = arith.constant 0 : index
    %12 = vector.load %arg7[%c0_10, %c0_11] : memref<8x128xf32, #tpu.memory_space<vmem>>, vector<8x128xf32>
    tpu.vector_store %arg7[%c0_10, %c0_11], %11 {strides = array<i32>} : memref<8x128xf32, #tpu.memory_space<vmem>>, vector<8x128xf32>,
    %13 = arith.subf %10, %11 : vector<8x128xf32>
    %14 = math.exp %13 : vector<8x128xf32>
    %c0_12 = arith.constant 0 : index
    %c0_13 = arith.constant 0 : index
    %15 = vector.load %arg8[%c0_12, %c0_13] : memref<8x128xf32, #tpu.memory_space<vmem>>, vector<8x128xf32>
    %16 = arith.mulf %14, %15 : vector<8x128xf32>
    %c0_14 = arith.constant 0 : index
    %c0_15 = arith.constant 0 : index
    %17 = vector.load %arg9[%c0_14, %c0_15] : memref<8x128xf32, #tpu.memory_space<vmem>>, vector<8x128xf32>
    %c0_16 = arith.constant 0 : index
    %c0_17 = arith.constant 0 : index
    %18 = vector.load %arg10[%c0_16, %c0_17] : memref<8x128xf32, #tpu.memory_space<vmem>>, vector<8x128xf32>
    %19 = arith.subf %8, %11 : vector<8x128xf32>
    %20 = math.exp %19 : vector<8x128xf32>
    %21 = arith.addf %16, %20 : vector<8x128xf32>
    %22 = arith.addf %17, %9 : vector<8x128xf32>
    %23 = arith.mulf %8, %9 : vector<8x128xf32>
    %24 = arith.addf %18, %23 : vector<8x128xf32>
    %c0_18 = arith.constant 0 : index
    %c0_19 = arith.constant 0 : index
    %25 = vector.load %arg8[%c0_18, %c0_19] : memref<8x128xf32, #tpu.memory_space<vmem>>, vector<8x128xf32>
    tpu.vector_store %arg8[%c0_18, %c0_19], %21 {strides = array<i32>} : memref<8x128xf32, #tpu.memory_space<vmem>>, vector<8x128xf32>,
    %c0_20 = arith.constant 0 : index
    %c0_21 = arith.constant 0 : index
    %26 = vector.load %arg9[%c0_20, %c0_21] : memref<8x128xf32, #tpu.memory_space<vmem>>, vector<8x128xf32>
    tpu.vector_store %arg9[%c0_20, %c0_21], %22 {strides = array<i32>} : memref<8x128xf32, #tpu.memory_space<vmem>>, vector<8x128xf32>,
    %c0_22 = arith.constant 0 : index
    %c0_23 = arith.constant 0 : index
    %27 = vector.load %arg10[%c0_22, %c0_23] : memref<8x128xf32, #tpu.memory_space<vmem>>, vector<8x128xf32>
    tpu.vector_store %arg10[%c0_22, %c0_23], %24 {strides = array<i32>} : memref<8x128xf32, #tpu.memory_space<vmem>>, vector<8x128xf32>,
    %c3_i32 = arith.constant 3 : i32
    %28 = arith.cmpi eq, %arg1, %c3_i32 : i32
    %29 = arith.extui %28 : i1 to i32
    %c0_i32_24 = arith.constant 0 : i32
    %30 = arith.cmpi ne, %29, %c0_i32_24 : i32
    scf.if %30 {
      %c0_25 = arith.constant 0 : index
      %c0_26 = arith.constant 0 : index
      %31 = vector.load %arg7[%c0_25, %c0_26] : memref<8x128xf32, #tpu.memory_space<vmem>>, vector<8x128xf32>
      %cst_27 = arith.constant dense<0xFF800000> : vector<8xf32>
      %32 = vector.multi_reduction <maximumf>, %31, %cst_27 [1] : vector<8x128xf32> to vector<8xf32>
      %33 = vector.shape_cast %32 : vector<8xf32> to vector<8x1xf32>
      %34 = vector.broadcast %33 : vector<8x1xf32> to vector<8x128xf32>
      %35 = arith.subf %31, %34 : vector<8x128xf32>
      %36 = math.exp %35 : vector<8x128xf32>
      %c0_28 = arith.constant 0 : index
      %c0_29 = arith.constant 0 : index
      %37 = vector.load %arg8[%c0_28, %c0_29] : memref<8x128xf32, #tpu.memory_space<vmem>>, vector<8x128xf32>
      %38 = arith.mulf %36, %37 : vector<8x128xf32>
      %cst_30 = arith.constant dense<0.000000e+00> : vector<8xf32>
      %39 = vector.multi_reduction <add>, %38, %cst_30 [1] : vector<8x128xf32> to vector<8xf32>
      %40 = vector.shape_cast %39 : vector<8xf32> to vector<8x1xf32>
      %41 = math.log %40 : vector<8x1xf32>
      %42 = arith.addf %33, %41 : vector<8x1xf32>
      %c0_31 = arith.constant 0 : index
      %c0_32 = arith.constant 0 : index
      %43 = vector.load %arg9[%c0_31, %c0_32] : memref<8x128xf32, #tpu.memory_space<vmem>>, vector<8x128xf32>
      %cst_33 = arith.constant dense<0.000000e+00> : vector<8xf32>
      %44 = vector.multi_reduction <add>, %43, %cst_33 [1] : vector<8x128xf32> to vector<8xf32>
      %45 = vector.shape_cast %44 : vector<8xf32> to vector<8x1xf32>
      %c0_34 = arith.constant 0 : index
      %c0_35 = arith.constant 0 : index
      %46 = vector.load %arg10[%c0_34, %c0_35] : memref<8x128xf32, #tpu.memory_space<vmem>>, vector<8x128xf32>
      %cst_36 = arith.constant dense<0.000000e+00> : vector<8xf32>
      %47 = vector.multi_reduction <add>, %46, %cst_36 [1] : vector<8x128xf32> to vector<8xf32>
      %48 = vector.shape_cast %47 : vector<8xf32> to vector<8x1xf32>
      %49 = arith.mulf %42, %45 : vector<8x1xf32>
      %50 = arith.subf %48, %49 : vector<8x1xf32>
      %c0_37 = arith.constant 0 : index
      %c0_38 = arith.constant 0 : index
      %51 = vector.load %arg6[%c0_37, %c0_38] : memref<8x1xf32, #tpu.memory_space<vmem>>, vector<8x1xf32>
      tpu.vector_store %arg6[%c0_37, %c0_38], %50 {strides = array<i32>} : memref<8x1xf32, #tpu.memory_space<vmem>>, vector<8x1xf32>,
    } else {
    }
    return
  }
  func.func @transform_0(%arg0: i32, %arg1: i32) -> (i32, i32) {
    %c0_i32 = arith.constant 0 : i32
    %c0_i32_0 = arith.constant 0 : i32
    return %arg0, %c0_i32 : i32, i32
  }
  func.func @transform_1(%arg0: i32, %arg1: i32) -> (i32, i32) {
    %c0_i32 = arith.constant 0 : i32
    %c0_i32_0 = arith.constant 0 : i32
    return %c0_i32, %arg1 : i32, i32
  }
  func.func @transform_2(%arg0: i32, %arg1: i32) -> (i32, i32) {
    %c0_i32 = arith.constant 0 : i32
    %c0_i32_0 = arith.constant 0 : i32
    return %c0_i32, %arg1 : i32, i32
  }
  func.func @transform_3(%arg0: i32, %arg1: i32) -> (i32, i32) {
    %c0_i32 = arith.constant 0 : i32
    return %arg0, %arg1 : i32, i32
  }
  func.func @transform_4(%arg0: i32, %arg1: i32) -> (i32, i32) {
    %c0_i32 = arith.constant 0 : i32
    %c0_i32_0 = arith.constant 0 : i32
    return %arg0, %c0_i32 : i32, i32
  }
}

</mosaic_0001>

<bundles_post_ra>
// kernel: tpu_custom_call.1
= control target key start
LH: loop header
LB: loop body
LE: loop exit
PB: predicated region body
PF: predicated region fallthrough
CT: control target
= control target key end

     0   :  { %9 = vsyncpa [#allocation7], 0  ;;  %s1086_s0 = inlined_call_operand.hbm [shape: f32[8,32], index: 0, kind: input, shape index: {}]   ;;  %s1087_s1 = inlined_call_operand.hbm [shape: f32[32,512], index: 1, kind: input, shape index: {}]   ;;  %s1088_s2 = inlined_call_operand.vmem [shape: f32[1,512], index: 2, kind: input, shape index: {}]   ;;  %s1089_s3 = inlined_call_operand.hbm [shape: f32[8,512], index: 3, kind: input, shape index: {}]   ;;  %s1090_s4 = inlined_call_operand.vmem [shape: f32[8,1], index: 4, kind: output, shape index: {}]  }
   0x1   :  { %10 = vsyncpa [#allocation9], 0 }
   0x2   :  { %12 = vsyncpa [#allocation9 + $0x1], 0  ;;  %s864_s15 = smov 0   ;;  %s866_s16 = smov 0  }
   0x3   :  { %s868_s17 = smov 0   ;;  %s870_s18 = smov 0  }
   0x4   :  { %s872_s19 = smov 0   ;;  %s874_s20 = smov 0  }
   0x5 LB: > { %s27_s21 = sadd.s32 1, %s822_s19  ;;  %s63_s22 = sadd.s32 1, %s814_s17  ;;  %s826_s20 = sphi %s874_s20, %s18_s20   ;;  %s822_s19 = sphi %s872_s19, %s1109_s19   ;;  %s818_s18 = sphi %s870_s18, %s1108_s18   ;;  %s814_s17 = sphi %s868_s17, %s1107_s17   ;;  %s810_s16 = sphi %s866_s16, %s1106_s16   ;;  %s806_s15 = sphi %s864_s15, %s1105_s15  }
   0x6   : > { %p28_p0 = scmp.ge.s32.totalorder %s27_s21, 4  ;;  %p70_p1 = scmp.ne.s32.totalorder %s814_s17, %s810_s16 }
   0x7   : > { %p71_p2 = scmp.eq.s32.totalorder %s826_s20, 0  ;;  %p617_p4 = scmp.lt.s32.totalorder %s826_s20, 4 }
   0x8   : > { %s1111_s21 = smov (%p28_p0, %s27_s21), 0  ;;  %s193_s24 = sand.u32 1, %s826_s20  }
   0x9   : > { %p72_p3 = por %p71_p2, %p70_p1  ;;  %s60_s23 = ssub.s32 %s822_s19, %s1111_s21 }
   0xa   : > { %p61_p5 = scmp.eq.s32.totalorder %s60_s23, 0  ;;  %s195_s25 = sand.u32 1, %s814_s17  }
   0xb   : > { %s561_s26 = sshll.u32 %s822_s19, 7  ;;  %s560_s28 = sshll.u32 %s195_s25, 5 }
   0xc   : > { %s908_s27 = scalar_select %p61_p5, %s814_s17, %s63_s22  }
   0xd   : > { %s917_s5 = scalar_lea.hbm %s1087_s1, %s561_s26  ;;  %p919_p6 = pnand %p617_p4, %p72_p3 }
   0xe   : > { %s197_s7 = scalar_lea.vmem [#allocation8], %s560_s28  ;;  %s925_s9 = scalar_lea.sflag [#allocation9], %s193_s24 }
   0xf   : > { %s203_s8 = sshll.u32 %s197_s7, 4  ;;  %s684_s10 = scalar_lea.hbm %s917_s5, 512  ;;  %s923_s8 = int_to_ptr.vmem [resolvable:$true] %s203_s8 }
  0x10   : > { %p685_p7 = scmp.ne.s32.totalorder %s917_s5, %s684_s10  ;;  %p686_p8 = pneg %p919_p6 }
  0x11   : > { %s689_s13 = scalar_lea.hbm %s1087_s1, 2048  ;;  %p690_p11 = scmp.lt.u32.totalorder %s917_s5, %s1087_s1 }
  0x12   : > { %p687_p9 = pnand %p686_p8, %p685_p7  ;;  %p691_p12 = scmp.lt.u32.totalorder %s689_s13, %s684_s10 }
  0x13   : > { %p693_p0 = scmp.lt.u32.totalorder %s684_s10, %s917_s5 }
  0x14   : > { %p688_p10 = pneg %p687_p9  ;;  %p692_p13 = por %p691_p12, %p690_p11 }
  0x16   : > { %p694_p1 = por %p693_p0, %p692_p13 }
  0x18   : > { %p695_p2 = pnand %p694_p1, %p688_p10 }
  0x1a   : > { %698 = shalt.err (!%p695_p2)
}
  0x1b   : > { %s699_s23 = scalar_lea.vmem %s923_s8, 512  ;;  %s828_s24 = smov [#allocation8]  }
  0x1c   : > { %p700_p3 = scmp.ne.s32.totalorder %s923_s8, %s699_s23  ;;  %s704_s28 = sshll.u32 %s828_s24, 4  ;;  %s705_s28 = int_to_ptr.vmem [resolvable:$false] %s704_s28 }
  0x1d   : > { %s706_s29 = scalar_lea.vmem %s705_s28, 1024  ;;  %p707_p7 = scmp.lt.s32.totalorder %s923_s8, %s705_s28 }
  0x1e   : > { %p702_p4 = pnand %p700_p3, %p686_p8  ;;  %p708_p9 = scmp.lt.s32.totalorder %s706_s29, %s699_s23 }
  0x20   : > { %p703_p5 = pneg %p702_p4  ;;  %p709_p11 = por %p708_p9, %p707_p7 }
  0x22   : > { %p710_p12 = pnand %p709_p11, %p703_p5 }
  0x24   : > { %713 = shalt.err (!%p710_p12)
}
  0x25   : > { %s829_s30 = smov 512   ;;  %s830_s7 = smov 128  }
  0x26   : > { %s831_s10 = smov 8   ;;  %s556_s11 = sadd.s32 4294967295, %s826_s20  }
  0x27   : > { %612 = dma.hbm_to_vmem [thread:$0]  (!%p919_p6), %s917_s5, 512, %s923_s8, %s925_s9, %s829_s30, %s830_s7, %s831_s10  }
  0x28   : > { %p76_p10 = scmp.ne.s32.totalorder %s810_s16, %s806_s15  ;;  %p958_p13 = scmp.eq.s32.totalorder %s556_s11, 0 }
  0x29   : > { %p557_p0 = scmp.ge.s32.totalorder %s826_s20, 1  ;;  %p167_p1 = scmp.lt.s32.totalorder %s826_s20, 5 }
  0x2a   : > { %s1097_s12 = scalar_select %p958_p13, 1, 0 }
  0x2b   : > { %p966_p2 = por %p958_p13, %p76_p10  ;;  %p970_p3 = pnand %p557_p0, %p167_p1 }
  0x2c   : > { %s832_s15 = smov [#allocation6]   ;;  %s562_s8 = sshll.u32 %s195_s25, 3 }
  0x2d   : > { %s1098_s13 = scalar_select %p966_p2, 1, 0 }
  0x2e   : > { %s1099_s14 = scalar_select %p970_p3, 1, 0 }
  0x2f   : > { %s182_s5 = sshll.u32 %s832_s15, 4  ;;  %p605_p4 = pneg %p970_p3  ;;  %s974_s5 = int_to_ptr.vmem [resolvable:$true] %s182_s5 }
  0x30   : > { %s985_s24 = scalar_lea.hbm %s1089_s3, %s561_s26  ;;  %s223_s28 = scalar_lea.vmem [#allocation10], %s562_s8 }
  0x31   : > { %s232_s29 = sshll.u32 %s223_s28, 4  ;;  %p989_p5 = pnand %p605_p4, %p958_p13  ;;  %s233_s29 = int_to_ptr.vmem [resolvable:$true] %s232_s29 }
  0x32   : > { %s714_s25 = scalar_lea.hbm %s985_s24, 128  ;;  %s719_s10 = scalar_lea.hbm %s1089_s3, 512 }
  0x33   : > { %s1100_s30 = scalar_select %p989_p5, 1, 0 }
  0x34   : > { %p715_p7 = scmp.ne.s32.totalorder %s985_s24, %s714_s25  ;;  %p720_p12 = scmp.lt.u32.totalorder %s985_s24, %s1089_s3 }
  0x35   : > { %p721_p10 = scmp.lt.u32.totalorder %s719_s10, %s714_s25  ;;  %p723_p1 = scmp.lt.u32.totalorder %s714_s25, %s985_s24 }
  0x36   : > { %p717_p9 = pnand %p715_p7, %p686_p8 }
  0x37   : > { %p722_p0 = por %p721_p10, %p720_p12 }
  0x38   : > { %p718_p11 = pneg %p717_p9 }
  0x39   : > { %p724_p4 = por %p723_p1, %p722_p0 }
  0x3b   : > { %p725_p2 = pnand %p724_p4, %p718_p11 }
  0x3d   : > { %728 = shalt.err (!%p725_p2)
}
  0x3e   : > { %s729_s8 = scalar_lea.vmem %s233_s29, 128  ;;  %s833_s23 = smov [#allocation10]  }
  0x3f   : > { %p730_p13 = scmp.ne.s32.totalorder %s233_s29, %s729_s8  ;;  %s734_s28 = sshll.u32 %s833_s23, 4  ;;  %s735_s28 = int_to_ptr.vmem [resolvable:$false] %s734_s28 }
  0x40   : > { %s736_s26 = scalar_lea.vmem %s735_s28, 256  ;;  %p737_p3 = scmp.lt.s32.totalorder %s233_s29, %s735_s28 }
  0x41   : > { %p732_p7 = pnand %p730_p13, %p686_p8  ;;  %p738_p5 = scmp.lt.s32.totalorder %s736_s26, %s729_s8 }
  0x43   : > { %p733_p9 = pneg %p732_p7  ;;  %p739_p10 = por %p738_p5, %p737_p3 }
  0x45   : > { %p740_p12 = pnand %p739_p10, %p733_p9 }
  0x47   : > { %743 = shalt.err (!%p740_p12)
}
  0x48   : > { %615 = dma.hbm_to_vmem [thread:$0]  (!%p919_p6), %s985_s24, 128, %s233_s29, %s925_s9  }
  0x49   : > { %s744_s10 = scalar_lea.hbm %s1086_s0, 128  ;;  %p1101_p13 = scmp.ne.s32.totalorder %s1100_s30, 0 }
  0x4a   : > { %p745_p8 = scmp.ne.s32.totalorder %s1086_s0, %s744_s10  ;;  %p751_p5 = scmp.lt.u32.totalorder %s744_s10, %s1086_s0 }
  0x4b   : > { %p746_p2 = pneg %p1101_p13 }
  0x4d   : > { %p747_p11 = pnand %p746_p2, %p745_p8 }
  0x4f   : > { %p748_p3 = pneg %p747_p11 }
  0x51   : > { %p753_p0 = pnand %p751_p5, %p748_p3 }
  0x53   : > { %756 = shalt.err (!%p753_p0)
}
  0x54   : > { %s757_s6 = scalar_lea.vmem %s974_s5, 128  ;;  %p765_p7 = scmp.lt.s32.totalorder %s974_s5, %s974_s5 }
  0x55   : > { %p758_p6 = scmp.ne.s32.totalorder %s974_s5, %s757_s6  ;;  %p766_p9 = scmp.lt.s32.totalorder %s757_s6, %s757_s6 }
  0x57   : > { %p760_p1 = pnand %p758_p6, %p746_p2  ;;  %p767_p10 = por %p766_p9, %p765_p7 }
  0x59   : > { %p761_p4 = pneg %p760_p1 }
  0x5b   : > { %p768_p12 = pnand %p767_p10, %p761_p4 }
  0x5d   : > { %771 = shalt.err (!%p768_p12)
}
  0x5e   : > { %608 = dma.hbm_to_vmem [thread:$0]  (!%p1101_p13), %s1086_s0, 128, %s974_s5, [#allocation7]  }
  0x5f   : > { %p1102_p8 = scmp.ne.s32.totalorder %s1099_s14, 0 }
  0x60   : > { %p1103_p11 = scmp.ne.s32.totalorder (!%p1102_p8), %s1097_s12, 0 }
  0x61   : > { %241 = sbr.rel (%p1102_p8) target bundleno = 675 (0x2a3), region = 36 }
  0x68   : > { %797 = dma.done.wait (%p1103_p11), [#allocation7], 128  }
  0x69   : > { %799 = vsyncadd (%p1103_p11), [#allocation7], 4294967168  ;;  %s247_s29 = sand.u32 1, %s556_s11   ;;  %s249_s30 = sand.u32 1, %s810_s16  }
  0x6a   : > { %s566_s28 = sshll.u32 %s249_s30, 5  ;;  %s248_s26 = scalar_lea.sflag [#allocation9], %s247_s29 }
  0x6b   : > { %s251_s25 = scalar_lea.vmem [#allocation8], %s566_s28  ;;  %p1104_p2 = scmp.ne.s32.totalorder %s1098_s13, 0 }
  0x6d   : > { %801 = dma.done.wait (%p1104_p2), %s248_s26, 640  }
  0x6e   : > { %803 = vsyncadd (%p1104_p2), %s248_s26, 4294966656  ;;  %s1047_s14 = sshll.u32 %s249_s30, 3  ;;  %p292_p13 = scmp.lt.s32.totalorder %s818_s18, 3 }
  0x6f   : > { %s260_s10 = scalar_lea.vmem [#allocation10], %s1047_s14  ;;  %p568_p3 = scmp.ne.s32.totalorder %s818_s18, 0 }
  0x70   : > { %s1051_s12 = scalar_select %p292_p13, %s818_s18, 3 }
  0x71   : > { %302 = sbr.rel (%p568_p3) target bundleno = 120 (0x78), region = 52  ;;  %v834_v0 = vmov (!%p568_p3), -inf   ;;  %v835_v1 = vmov (!%p568_p3), 0.0  }
  0x72   : > { %s294_s7 = scalar_lea.vmem %s1088_s2, %s1051_s12  ;;  %303 = vst [vmem:[#allocation2] sm:$0xff] (!%p568_p3), %v834_v0  ;;  %304 = vst [vmem:[#allocation3] sm:$0xff] (!%p568_p3), %v835_v1 }
  0x73   : > { %305 = vst [vmem:[#allocation4] sm:$0xff] (!%p568_p3), %v835_v1  ;;  %306 = vst [vmem:[#allocation5] sm:$0xff] (!%p568_p3), %v835_v1 }
  0x78 PF: > { %v308_v2 = vld [vmem:[%s251_s25] sm:$0xff]  ;;  %v309_v3 = vld [vmem:[%s251_s25 + $0x8] sm:$0xff]  ;;  %v310_v4 = vld [vmem:[%s251_s25 + $0x10] sm:$0xff]  ;;  %v836_v5 = vmov 0.0|0.0   ;;  %vm837_vm0 = vmmov 0   ;;  %v838_v8 = vmov 0.0  }
  0x79   : > { %591 = vmatprep.subr.bf16.mxu0 %v836_v5  ;;  %v592_v6 = vpack.c.bf16 %v309_v3, %v308_v2  ;;  %v311_v7 = vld [vmem:[%s251_s25 + $0x18] sm:$0xff]  ;;  %588 = vmatprep.mubr.msk.f32.mxu0 %vm837_vm0, %v838_v8  ;;  %vm319_vm1 = vcmask 261120   ;;  %v393_v12 = vld [vmem:[%s260_s10] sm:$0xff]  ;;  %v569_v14 = vld [vmem:[%s294_s7] ss:$0 sm:$0xff]  ;;  %p571_p5 = scmp.ne.s32.totalorder %s818_s18, 3 }
  0x7a   : > { %v595_v9 = vpack.c.bf16 %v311_v7, %v310_v4  ;;  %v307_v10 = vld [vmem:[#allocation6] sm:$0xff]  ;;  %v402_v11 = vld [vmem:[#allocation4] sm:$0xff]  ;;  %v403_v19 = vld [vmem:[#allocation5] sm:$0xff]  ;;  %vm439_vm2 = vcmask (!%p571_p5), 7168  }
  0x7b   : > { %593 = vmatpush3.bf16.msra.mxu0 %v592_v6  ;;  %v408_v13 = vadd.f32 %v402_v11, %v393_v12  ;;  %v394_v16 = vld [vmem:[#allocation2] sm:$0xff]  ;;  %v400_v27 = vld [vmem:[#allocation3] sm:$0xff] }
  0x7c   : > { %594 = vmatprep.subr.bf16.mxu0 %v836_v5 }
  0x7d   : > { %412 = vst [vmem:[#allocation4] sm:$0xff] %v408_v13 }
  0x7f   : > { %596 = vmatpush3.bf16.msra.mxu0 %v595_v9 }
  0x82   : > { %589 = vmatmul.mubr.msk.f32.vlgmr.msra.gmra.mrb[0].mxu0 %vm319_vm1, %v307_v10 }
  0x84   : > { %v431_v33 = vld [vmem:[#allocation4] sm:$0xff] (!%p571_p5) }
  0x85   : > { %432 = vadd.xlane.f32.xlu1 (!%p571_p5), %v431_v33 }
 0x112   : > { %v433_v42 = vpop.xlane.xlu1 (!%p571_p5), %432 }
 0x155   : > { %v389_v15 = vpop.f32.mrb[0].mxu0 }
 0x156   : > { %v390_v17 = vadd.f32 %v569_v14, %v389_v15  ;;  %v590_v18 = vpop.f32.mrb[1].mxu0 }
 0x158   : > { %v395_v20 = vmax.f32 %v394_v16, %v390_v17  ;;  %v409_v21 = vmul.f32 %v393_v12, %v390_v17 }
 0x15a   : > { %396 = vst [vmem:[#allocation2] sm:$0xff] %v395_v20  ;;  %v397_v22 = vsub.f32 %v394_v16, %v395_v20  ;;  %v404_v23 = vsub.f32 %v390_v17, %v395_v20  ;;  %v410_v24 = vadd.f32 %v409_v21, %v403_v19 }
 0x15c   : > { %v398_v25 = vmul.f32 1.442695, %v397_v22  ;;  %v405_v26 = vmul.f32 1.442695, %v404_v23  ;;  %413 = vst [vmem:[#allocation5] sm:$0xff] %v410_v24 }
 0x15e   : > { %676 = vpow2.f32 %v398_v25 }
 0x15f   : > { %678 = vpow2.f32 %v405_v26 }
 0x161   : > { %v418_v32 = vld [vmem:[#allocation2] sm:$0xff] (!%p571_p5) }
 0x162   : > { %419 = vmax.xlane.f32.xlu0 (!%p571_p5), %v418_v32 }
 0x163   : > { %v434_v34 = vld [vmem:[#allocation5] sm:$0xff] (!%p571_p5) }
 0x164   : > { %435 = vadd.xlane.f32.xlu1 (!%p571_p5), %v434_v34 }
 0x167   : > { %417 = sbr.rel (%p571_p5) target bundleno = 675 (0x2a3), region = 56 }
 0x168   : > { %v677_v28 = vpop.eup %676 }
 0x169   : > { %v401_v29 = vmul.f32 %v677_v28, %v400_v27  ;;  %v679_v30 = vpop.eup %678 }
 0x16b   : > { %v407_v31 = vadd.f32 %v679_v30, %v401_v29 }
 0x16d   : > { %411 = vst [vmem:[#allocation3] sm:$0xff] %v407_v31 }
 0x174   : > { %v424_v38 = vld [vmem:[#allocation3] sm:$0xff] }
 0x1ef   : > { %v420_v35 = vpop.xlane.xlu0 %419 }
 0x1f0   : > { %v421_v36 = vsub.f32 %v418_v32, %v420_v35 }
 0x1f1   : > { %v436_v46 = vpop.xlane.xlu1 %435 }
 0x1f2   : > { %v422_v37 = vmul.f32 1.442695, %v421_v36 }
 0x1f4   : > { %680 = vpow2.f32 %v422_v37 }
 0x1fe   : > { %v681_v39 = vpop.eup %680 }
 0x1ff   : > { %v425_v40 = vmul.f32 %v681_v39, %v424_v38 }
 0x201   : > { %426 = vadd.xlane.f32.xlu0 %v425_v40 }
 0x28e   : > { %v427_v41 = vpop.xlane.xlu0 %426 }
 0x28f   : > { %682 = vlog2.f32 %v427_v41 }
 0x299   : > { %v683_v43 = vpop.eup %682 }
 0x29a   : > { %v429_v44 = vmul.f32 0.6931472, %v683_v43 }
 0x29c   : > { %v430_v45 = vadd.f32 %v429_v44, %v420_v35 }
 0x29e   : > { %v437_v47 = vmul.f32 %v433_v42, %v430_v45 }
 0x2a0   : > { %v438_v48 = vsub.f32 %v436_v46, %v437_v47 }
 0x2a2   : > { %440 = vst.msk [vmem:[%s1090_s4] sm:$0xff] %vm439_vm2, %v438_v48 }
 0x2a3 PF: > { %s18_s20 = sadd.s32 1, %s826_s20   ;;  %s1105_s15 = smov %s810_s16 }
 0x2a4   : > { %p15_p0 = scmp.ge.s32.totalorder %s18_s20, 6   ;;  %s1106_s16 = smov %s814_s17 }
 0x2a5   : > { %s1107_s17 = smov %s908_s27  ;;  %s1108_s18 = smov %s822_s19 }
 0x2a6   : > { %s1109_s19 = smov %s1111_s21  ;;  %17 = sbr.rel (!%p15_p0) target bundleno = 5 (0x5), region = 104 }
 0x2ad   :  { %460 = vsyncpa [#allocation7], 1 }
 0x2ae   :  { %462 = vsyncpa [#allocation7 + $0x1], 1 }
 0x2af   :  { %463 = vsyncpa [#allocation9], 1 }
 0x2b0   :  { %465 = vsyncpa [#allocation9 + $0x1], 1 }

</bundles_post_ra>
